<compile_context>
chip_gen: v5e
topology: v5e:2x2
jax: 0.10.0
libtpu: 0.0.40
codegen_flags: <defaults>
</compile_context>

<pallas_src>
import functools

import jax
import jax.numpy as jnp
from jax.experimental import pallas as pl
from jax.experimental.pallas import tpu as pltpu


def _embed_kernel(patch_ref, w_ref, pos_ref, out_ref, *, tile_m, n_patches):
    """One M-tile of the flattened patch-embedding matmul.

    patch_ref: (tile_m, K) bf16        w_ref: (K, hidden) bf16 (grid-constant)
    pos_ref:   (tile_m or n_patches, hidden) f32 position emb with the conv
               bias pre-added (grid-constant, resident in VMEM)
    out_ref:   (tile_m, hidden) out_dtype
    """
    acc = jnp.dot(patch_ref[...], w_ref[...],
                  preferred_element_type=jnp.float32)       # MXU, f32 accumulate
    if pos_ref.shape[0] == tile_m:
        # Tile spans whole image(s): pos rows line up with the tile statically.
        pos = pos_ref[...]
    else:
        # Tile is a slice of one image: slice the resident table.  tile_m
        # divides n_patches and tile_m % 8 == 0, so start is sublane-aligned.
        start = (pl.program_id(0) * tile_m) % n_patches
        pos = pos_ref[pl.ds(pl.multiple_of(start, 8), tile_m), :]
    out_ref[...] = (acc + pos).astype(out_ref.dtype)
    # TODO(synk): training-mode Dropout (p=dropout_rate) would need in-kernel
    # pltpu.prng_seed / pltpu.prng_random_bits masking; eval mode is identity.


def _choose_tile_m(M, n_patches, K, hidden, out_itemsize,
                   target=1024, vmem_budget=24 * 1024 * 1024):
    """Pick an M tile for the flattened (B*n_patches, K) matmul.

    Only exact divisors of M are considered (cheap trace-time loop).  A tile t
    is valid if the position-embedding add stays block-resolvable (t spans
    whole images, or t is an 8-aligned divisor of n_patches) and the TPU
    (8,128) second-minor block rule holds.  Among valid tiles prefer, in order:
      * footprint under the VMEM budget (double-buffered streaming operands),
      * >= 4 grid steps with an even count (v7x: 2 TCs x >= 2 pipelined steps),
      * >= 2 grid steps (pipelining at all),
      * MXU-aligned rows (256, then 128), then bf16 sublane packing (16),
      * the largest remaining tile.
    """
    # Streaming, double-buffered VMEM per output row: bf16 patches + out tile.
    bytes_per_row = 2 * (2 * K + out_itemsize * hidden)
    target = int(min(target, max(8, vmem_budget // max(bytes_per_row, 1))))

    divisors = set()
    i = 1
    while i * i <= M:
        if M % i == 0:
            divisors.add(i)
            divisors.add(M // i)
        i += 1

    def valid(t):
        if t != M and t % 8:
            return False                                  # (8,128) block rule
        if t % n_patches == 0:
            return True                                   # whole image(s)
        return n_patches % t == 0 and t % 8 == 0          # aligned sub-image

    cands = [t for t in sorted(divisors) if valid(t)]
    if not cands:
        return M   # TODO(synk): pad M up to an aligned tile for awkward shapes

    def score(t):
        g = M // t
        return (t <= target,
                g >= 4 and g % 2 == 0,
                g >= 2,
                t % 256 == 0,
                t % 128 == 0,
                t % 16 == 0,
                t)

    return max(cands, key=score)


@functools.partial(jax.jit, static_argnames=("patch_size", "out_dtype"))
def embeddings_forward(x_nchw, conv_w, conv_b, pos_emb, *, patch_size,
                       out_dtype=jnp.float32):
    """TransUNet Embeddings.forward (eval mode, non-hybrid path).

    x_nchw: (B, C, H, W); conv_w: (hidden, C, P, P); conv_b: (hidden,);
    pos_emb: (1, n_patches, hidden).  Returns (embeddings, features=None).

    Precision contract: the patch matmul runs in bf16 on the MXU with f32
    accumulation (PyTorch uses f32 throughout); adds are f32.  Pass
    out_dtype=jnp.bfloat16 when the downstream transformer consumes bf16 --
    it halves the HBM writeback of this memory-bound kernel.
    """
    B, C, H, W = x_nchw.shape
    P = patch_size
    hidden = conv_w.shape[0]
    Hp, Wp = H // P, W // P
    n_patches = Hp * Wp
    K = C * P * P
    M = B * n_patches
    out_itemsize = jnp.dtype(out_dtype).itemsize

    # --- glue: im2col (Conv2d with kernel == stride == P, NCHW), in bf16 ----
    # (B, C, Hp, P, Wp, P) -> (B, Hp, Wp, C, P, P) -> (B*n_patches, K)
    # TODO(synk): fold this cast+transpose into the kernel's input DMA
    # (memory_space=pl.ANY + per-tile strided copies) to avoid materializing
    # the (M, K) bf16 intermediate; today it is one fused XLA cast+transpose.
    xb = x_nchw.astype(jnp.bfloat16)
    patches = xb.reshape(B, C, Hp, P, Wp, P)
    patches = patches.transpose(0, 2, 4, 1, 3, 5).reshape(M, K)

    # PyTorch conv weight (hidden, C, P, P) -> (K, hidden), bf16 for the MXU.
    w_mat = conv_w.reshape(hidden, K).T.astype(jnp.bfloat16)

    tile_m = _choose_tile_m(M, n_patches, K, hidden, out_itemsize)
    grid_m = M // tile_m

    # Conv bias folded into the position embedding: one resident f32 table,
    # one fewer input stream and one fewer broadcasted add per tile.
    pos_b = (pos_emb.reshape(n_patches, hidden)
             + conv_b.reshape(1, hidden)).astype(jnp.float32)
    if tile_m % n_patches == 0:            # tile spans whole image(s)
        rep = tile_m // n_patches
        pos_arr = jnp.tile(pos_b, (rep, 1)) if rep > 1 else pos_b
    else:                                  # tile_m | n_patches, 8-aligned
        pos_arr = pos_b                    # full table resident; sliced in-kernel

    # VMEM: double-buffered streaming operands + grid-constant residents.
    vmem_needed = (2 * tile_m * K * 2                      # patches (bf16)
                   + 2 * tile_m * hidden * out_itemsize    # output tile
                   + 2 * K * hidden * 2                    # weight (resident)
                   + 2 * pos_arr.shape[0] * hidden * 4)    # pos+bias (resident)
    vmem_limit = min(64 * 1024 * 1024,
                     max(vmem_needed + 4 * 1024 * 1024, 16 * 1024 * 1024))

    cost = pl.CostEstimate(
        flops=2 * M * K * hidden,
        transcendentals=0,
        bytes_accessed=(M * K * 2 + K * hidden * 2
                        + pos_arr.shape[0] * hidden * 4
                        + M * hidden * out_itemsize),
    )

    kernel = functools.partial(_embed_kernel, tile_m=tile_m, n_patches=n_patches)
    out = pl.pallas_call(
        kernel,
        out_shape=jax.ShapeDtypeStruct((M, hidden), out_dtype),
        grid_spec=pltpu.PrefetchScalarGridSpec(
            num_scalar_prefetch=0,
            grid=(grid_m,),
            in_specs=[
                pl.BlockSpec((tile_m, K), lambda m: (m, 0)),       # patches tile
                pl.BlockSpec((K, hidden), lambda m: (0, 0)),       # weight (resident)
                pl.BlockSpec(pos_arr.shape, lambda m: (0, 0)),     # pos+bias (resident)
            ],
            out_specs=pl.BlockSpec((tile_m, hidden), lambda m: (m, 0)),
        ),
        compiler_params=pltpu.CompilerParams(
            dimension_semantics=("parallel",),
            vmem_limit_bytes=vmem_limit,
        ),
        cost_estimate=cost,
    )(patches, w_mat, pos_arr)

    features = None  # non-hybrid path (config.patches['grid'] is None)
    return out.reshape(B, n_patches, hidden), features


if __name__ == "__main__":
    # Small config consistent with the module: img=16, patch=4 -> n_patches=16.
    B, C, IMG, P, HIDDEN = 2, 4, 16, 4, 32
    Hp = Wp = IMG // P
    n_patches = Hp * Wp
    K = C * P * P

    key = jax.random.PRNGKey(0)
    kx, kw, kb, kp = jax.random.split(key, 4)
    x = jax.random.normal(kx, (B, C, IMG, IMG), dtype=jnp.float32)
    conv_w = jax.random.normal(kw, (HIDDEN, C, P, P), dtype=jnp.float32) * 0.05
    conv_b = jax.random.normal(kb, (HIDDEN,), dtype=jnp.float32) * 0.05
    pos_emb = jax.random.normal(kp, (1, n_patches, HIDDEN), dtype=jnp.float32) * 0.02

    emb, feats = embeddings_forward(x, conv_w, conv_b, pos_emb, patch_size=P)
    emb = jax.block_until_ready(emb)

    # References: im2col matmul (same ordering as PyTorch Conv2d kernel==stride).
    ref_patches = x.reshape(B, C, Hp, P, Wp, P).transpose(0, 2, 4, 1, 3, 5)
    ref_patches = ref_patches.reshape(B * n_patches, K)
    w_ref = conv_w.reshape(HIDDEN, K).T

    # (a) bf16-matmul reference -- matches the kernel's precision path.
    ref_bf16 = jnp.dot(ref_patches.astype(jnp.bfloat16), w_ref.astype(jnp.bfloat16),
                       preferred_element_type=jnp.float32)
    ref_bf16 = ref_bf16.reshape(B, n_patches, HIDDEN) + conv_b[None, None, :] + pos_emb
    # (b) full-f32 reference (PyTorch semantics) -- loose tolerance for bf16 matmul.
    ref_f32 = (ref_patches @ w_ref).reshape(B, n_patches, HIDDEN) \
        + conv_b[None, None, :] + pos_emb

    assert emb.shape == (B, n_patches, HIDDEN)
    assert emb.dtype == jnp.float32
    assert jnp.allclose(emb, ref_bf16, atol=1e-2, rtol=1e-2)
    assert jnp.allclose(emb, ref_f32, atol=5e-2, rtol=5e-2)
    assert feats is None

    print("KERNEL_OK")
</pallas_src>

<mosaic_0001>
module attributes {stable_mosaic.version = 11 : i64} {
  func.func @_embed_kernel(%arg0: i32, %arg1: memref<8x64xbf16, #tpu.memory_space<vmem>>, %arg2: memref<64x32xbf16, #tpu.memory_space<vmem>>, %arg3: memref<16x32xf32, #tpu.memory_space<vmem>>, %arg4: memref<8x32xf32, #tpu.memory_space<vmem>>) attributes {dimension_semantics = [#tpu.dimension_semantics<parallel>], iteration_bounds = array<i64: 4>, scalar_prefetch = 0 : i64, scratch_operands = 0 : i64, tpu.core_type = #tpu.core_type<tc>, window_params = [{transform_indices = @transform_0, window_bounds = array<i64: 8, 64>}, {pipeline_mode = #tpu.pipeline_mode<synchronous>, transform_indices = @transform_1, window_bounds = array<i64: 64, 32>}, {pipeline_mode = #tpu.pipeline_mode<synchronous>, transform_indices = @transform_2, window_bounds = array<i64: 16, 32>}, {transform_indices = @transform_3, window_bounds = array<i64: 8, 32>}]} {
    %c0 = arith.constant 0 : index
    %c0_0 = arith.constant 0 : index
    %0 = vector.load %arg1[%c0, %c0_0] : memref<8x64xbf16, #tpu.memory_space<vmem>>, vector<8x64xbf16>
    %c0_1 = arith.constant 0 : index
    %c0_2 = arith.constant 0 : index
    %1 = vector.load %arg2[%c0_1, %c0_2] : memref<64x32xbf16, #tpu.memory_space<vmem>>, vector<64x32xbf16>
    %cst = arith.constant dense<0.000000e+00> : vector<8x32xf32>
    %2 = tpu.matmul %0, %1, %cst {dimension_numbers = #tpu.dot_dimension_numbers<[1], [0], [0], [1], [0, 0, 1, 1], [], []>} : vector<8x64xbf16>, vector<64x32xbf16>, vector<8x32xf32> -> vector<8x32xf32>
    %c8_i32 = arith.constant 8 : i32
    %3 = arith.muli %arg0, %c8_i32 : i32
    %c16_i32 = arith.constant 16 : i32
    %c0_i32 = arith.constant 0 : i32
    %4 = arith.cmpi eq, %c16_i32, %c0_i32 : i32
    %c1_i32 = arith.constant 1 : i32
    %5 = arith.select %4, %c1_i32, %c16_i32 : i32
    %6 = arith.remsi %3, %5 : i32
    %c0_i32_3 = arith.constant 0 : i32
    %7 = arith.cmpi ne, %6, %c0_i32_3 : i32
    %c0_i32_4 = arith.constant 0 : i32
    %8 = arith.cmpi slt, %6, %c0_i32_4 : i32
    %c0_i32_5 = arith.constant 0 : i32
    %9 = arith.cmpi slt, %5, %c0_i32_5 : i32
    %10 = arith.xori %8, %9 : i1
    %11 = arith.andi %10, %7 : i1
    %12 = arith.addi %6, %5 : i32
    %13 = arith.select %11, %12, %6 : i32
    %14 = tpu.assume_multiple %13, 8 : i32
    %15 = arith.index_cast %14 : i32 to index
    %c0_6 = arith.constant 0 : index
    %16 = vector.load %arg3[%15, %c0_6] : memref<16x32xf32, #tpu.memory_space<vmem>>, vector<8x32xf32>
    %17 = arith.addf %2, %16 : vector<8x32xf32>
    %c0_7 = arith.constant 0 : index
    %c0_8 = arith.constant 0 : index
    %18 = vector.load %arg4[%c0_7, %c0_8] : memref<8x32xf32, #tpu.memory_space<vmem>>, vector<8x32xf32>
    tpu.vector_store %arg4[%c0_7, %c0_8], %17 {strides = array<i32>} : memref<8x32xf32, #tpu.memory_space<vmem>>, vector<8x32xf32>,
    return
  }
  func.func @transform_0(%arg0: i32) -> (i32, i32) {
    %c0_i32 = arith.constant 0 : i32
    %c0_i32_0 = arith.constant 0 : i32
    return %arg0, %c0_i32 : i32, i32
  }
  func.func @transform_1(%arg0: i32) -> (i32, i32) {
    %c0_i32 = arith.constant 0 : i32
    %c0_i32_0 = arith.constant 0 : i32
    %c0_i32_1 = arith.constant 0 : i32
    return %c0_i32, %c0_i32_0 : i32, i32
  }
  func.func @transform_2(%arg0: i32) -> (i32, i32) {
    %c0_i32 = arith.constant 0 : i32
    %c0_i32_0 = arith.constant 0 : i32
    %c0_i32_1 = arith.constant 0 : i32
    return %c0_i32, %c0_i32_0 : i32, i32
  }
  func.func @transform_3(%arg0: i32) -> (i32, i32) {
    %c0_i32 = arith.constant 0 : i32
    %c0_i32_0 = arith.constant 0 : i32
    return %arg0, %c0_i32 : i32, i32
  }
}

</mosaic_0001>

<bundles_post_ra>
// kernel: embeddings_forward.1
= control target key start
LH: loop header
LB: loop body
LE: loop exit
PB: predicated region body
PF: predicated region fallthrough
CT: control target
= control target key end

     0   :  { %8 = vsyncpa [#allocation3], 0  ;;  %s568_s0 = inlined_call_operand.vmem [shape: bf16[32,64], index: 0, kind: input, shape index: {}]   ;;  %s569_s1 = inlined_call_operand.vmem [shape: bf16[64,32], index: 1, kind: input, shape index: {}]   ;;  %s570_s2 = inlined_call_operand.vmem [shape: f32[16,32], index: 2, kind: input, shape index: {}]   ;;  %s571_s3 = inlined_call_operand.hbm [shape: f32[32,32], index: 3, kind: output, shape index: {}]  }
   0x1   :  { %10 = vsyncpa [#allocation3 + $0x1], 0  ;;  %s468_s12 = smov 0   ;;  %s470_s13 = smov 0  }
   0x2   :  { %s472_s14 = smov 0   ;;  %s474_s15 = smov 0  }
   0x3 LB: > { %s489_s16 = sadd.s32 4294967295, %s446_s15   ;;  %s310_s17 = sadd.s32 4294967294, %s446_s15   ;;  %s446_s15 = sphi %s474_s15, %s577_s15   ;;  %s442_s14 = sphi %s472_s14, %s576_s14   ;;  %s438_s13 = sphi %s470_s13, %s575_s13   ;;  %s434_s12 = sphi %s468_s12, %s574_s12  }
   0x4   : > { %s493_s18 = sadd.s32 1, %s446_s15   ;;  %s91_s19 = sadd.s32 1, %s442_s14 }
   0x5   : > { %s88_s20 = ssub.s32 %s446_s15, %s493_s18  ;;  %p101_p0 = scmp.ne.s32.totalorder %s442_s14, %s438_s13 }
   0x6   : > { %p89_p1 = scmp.eq.s32.totalorder %s88_s20, 0  ;;  %p102_p2 = scmp.eq.s32.totalorder %s489_s16, 3 }
   0x7   : > { %p107_p3 = scmp.ne.s32.totalorder %s438_s13, %s434_s12  ;;  %p108_p4 = scmp.eq.s32.totalorder %s310_s17, 3 }
   0x8   : > { %s504_s21 = scalar_select %p89_p1, %s442_s14, %s91_s19  }
   0x9   : > { %p506_p5 = por %p102_p2, %p101_p0  ;;  %p510_p6 = por %p108_p4, %p107_p3 }
   0xa   : > { %p313_p7 = scmp.ge.s32.totalorder %s446_s15, 1  ;;  %p139_p8 = scmp.lt.s32.totalorder %s446_s15, 5 }
   0xc   : > { %p140_p9 = pnand %p313_p7, %p139_p8 }
   0xd   : > { %p162_p10 = scmp.lt.s32.totalorder (!%p140_p9), %s489_s16, 3  ;;  %s316_s10 = sshll.u32 (!%p140_p9), %s489_s16, 3 }
   0xe   : > { %143 = sbr.rel (%p140_p9) target bundleno = 169 (0xa9), region = 32  ;;  %s178_s11 = ssub.s32 (!%p140_p9), 0, %s316_s10 }
   0xf   : > { %s317_s17 = smin.u32 (!%p140_p9), %s316_s10, %s178_s11  ;;  %p177_p11 = scmp.lt.s32.totalorder (!%p140_p9), %s316_s10, 0 }
  0x10   : > { %s180_s19 = sand.u32 (!%p140_p9), 15, %s317_s17   ;;  %s159_s25 = sand.u32 (!%p140_p9), 1, %s438_s13  }
  0x11   : > { %s181_s20 = ssub.s32 (!%p140_p9), 0, %s180_s19  ;;  %s314_s26 = sshll.u32 (!%p140_p9), %s159_s25, 3 }
  0x12   : > { %s245_s5 = scalar_lea.hbm (!%p140_p9), %s571_s3, %s316_s10  ;;  %s235_s8 = scalar_lea.sflag (!%p140_p9), [#allocation3], %s159_s25 }
  0x13   : > { %v344_v0 = vld [vmem:[%s569_s1 + $0x18] sm:$0xff]  ;;  %v343_v1 = vld [vmem:[%s569_s1 + $0x10] sm:$0xff]  ;;  %s163_s28 = scalar_select %p162_p10, %s489_s16, 3  ;;  %v342_v2 = vld [vmem:[%s569_s1 + $0x8] sm:$0xff]  ;;  %vm215_vm0 = vcmask 523264   ;;  %vm232_vm1 = vcmask 261120  }
  0x14   : > { %223 = vmatpush.bf16.msra.mxu0 %v344_v0  ;;  %v341_v3 = vld [vmem:[%s569_s1] sm:$0xff]  ;;  %s579_s20 = smov (!%p177_p11, %s181_s20), %s180_s19  ;;  %s161_s16 = scalar_lea.vmem [#allocation2], %s314_s26 }
  0x15   : > { %s315_s4 = sshll.u32 %s163_s28, 2  ;;  %p319_p12 = scmp.lt.s32.totalorder %s579_s20, 0 }
  0x16   : > { %s165_s9 = scalar_lea.vmem %s568_s0, %s315_s4  ;;  %s187_s24 = sadd.s32 16, %s579_s20 }
  0x17   : > { %v167_v4 = vld [vmem:[%s165_s9] sm:$0xf]  ;;  %s581_s24 = smov (!%p319_p12, %s187_s24), %s579_s20  ;;  %s247_s6 = sshll.u32 %s161_s16, 4  ;;  %s248_s6 = int_to_ptr.vmem [resolvable:$true] %s247_s6 }
  0x18   : > { %224 = vmatpush.bf16.msra.mxu0 %v343_v1  ;;  %s189_s29 = scalar_lea.vmem %s570_s2, %s581_s24  ;;  %s249_s7 = sshll.u32 %s245_s5, 4  ;;  %s250_s7 = int_to_ptr.hbm [resolvable:$true] %s249_s7 }
  0x19   : > { %v190_v5 = vld [vmem:[%s189_s29] sm:$0xff]  ;;  %s398_s9 = sshra.s32 %s250_s7, 4  ;;  %s404_s19 = scalar_lea.hbm %s571_s3, 32  ;;  %s399_s9 = int_to_ptr.hbm [resolvable:$true] %s398_s9 }
  0x1a   : > { %s400_s11 = scalar_lea.hbm %s399_s9, 8  ;;  %p405_p2 = scmp.lt.s32.totalorder %s399_s9, %s571_s3 }
  0x1b   : > { %p401_p13 = scmp.ne.s32.totalorder %s399_s9, %s400_s11  ;;  %p406_p3 = scmp.lt.s32.totalorder %s404_s19, %s400_s11 }
  0x1c   : > { %225 = vmatpush.bf16.msra.mxu0 %v342_v2 }
  0x1d   : > { %p402_p0 = pnand %p401_p13, %p506_p5  ;;  %p407_p4 = por %p406_p3, %p405_p2 }
  0x1f   : > { %p403_p1 = pneg %p402_p0 }
  0x20   : > { %226 = vmatpush.bf16.msra.mxu0 %v341_v3 }
  0x21   : > { %p408_p7 = pnand %p407_p4, %p403_p1 }
  0x23   : > { %336 = vmatmul.msk.bf16.vlgmr.msra.gmra.mxu0 %vm215_vm0, %v167_v4 }
  0xa0   : > { %v228_v6 = vpop.f32.mrf.mxu0 }
  0xa1   : > { %v229_v7 = vadd.f32 %v228_v6, %v190_v5 }
  0xa3   : > { %233 = vst.msk [vmem:[%s161_s16] sm:$0xff] %vm232_vm1, %v229_v7 }
  0xa4   : > { %411 = shalt.err (!%p408_p7)
}
  0xa5   : > { %345 = dma.vmem_to_hbm [thread:$0]  (%p506_p5), %s248_s6, 128, %s250_s7, %s235_s8  }
  0xa8   : > { %v230_v8 = vpop.f32.mrf.mxu0 }
  0xa9 PF: > { %p351_p8 = scmp.ge.s32.totalorder %s446_s15, 2  ;;  %s261_s25 = sand.u32 1, %s434_s12  }
  0xaa   : > { %s262_s26 = scalar_lea.sflag [#allocation3], %s261_s25 }
  0xab   : > { %p348_p9 = pnand %p351_p8, %p510_p6 }
  0xad   : > { %p349_p10 = pneg %p348_p9 }
  0xaf   : > { %429 = dma.done.wait (%p349_p10), %s262_s26, 128  }
  0xb0   : > { %431 = vsyncadd (%p349_p10), %s262_s26, 4294967168  ;;  %p13_p11 = scmp.ge.s32.totalorder %s493_s18, 6   ;;  %s574_s12 = smov %s438_s13 }
  0xb1   : > { %s575_s13 = smov %s442_s14  ;;  %s576_s14 = smov %s504_s21 }
  0xb2   : > { %s577_s15 = smov %s493_s18  ;;  %15 = sbr.rel (!%p13_p11) target bundleno = 3 (0x3), region = 68 }
  0xb7   :  { %268 = vsyncpa [#allocation3], 1 }
  0xb8   :  { %270 = vsyncpa [#allocation3 + $0x1], 1 }

</bundles_post_ra>
